<compile_context>
chip_gen: v7x
topology: tpu7x:2x2x1
jax: 0.10.0
libtpu: 0.0.40
codegen_flags: <defaults>
</compile_context>

<pallas_src>
import functools
import math

import jax
import jax.numpy as jnp
from jax.experimental import pallas as pl
from jax.experimental.pallas import tpu as pltpu


def _round_up(x, m):
    return ((x + m - 1) // m) * m


def _tiles(c_in, c_out, max_tile):
    tk = min(_round_up(c_in, 128), max_tile)
    tn = min(_round_up(c_out, 128), max_tile)
    ck = _round_up(c_in, tk)
    co = _round_up(c_out, tn)
    return tk, tn, ck, co


# ----------------------------------------------------------------------------
# Fused (precomputed BN scale/shift) + ReLU + 2x2 avg-pool + 1x1 conv kernel
# ----------------------------------------------------------------------------
def _transition_kernel(s_ref, b_ref, t_ref, w_ref, o_ref, acc_ref=None):
    """One grid step over (i = row tile, j = Cout tile, k = Cin tile).

    s_ref : (1, tk)    f32  folded scale = 0.25 * gamma * rsqrt(var + eps)
    b_ref : (1, tk)    f32  folded shift = 0.25 * (beta - mean * gamma * rsqrt)
    t_ref : (4, tm, tk) bf16 the 4 spatial taps of each 2x2 pool window
    w_ref : (tk, tn)   bf16 1x1 conv weight slice, layout (Cin, Cout)
    o_ref : (tm, tn)   f32  pooled conv output rows (N*Ho*Wo order)
    acc_ref: (tm, tn)  f32  only allocated when there are multiple Cin tiles
    """
    x = t_ref[...].astype(jnp.float32)                         # (4, tm, tk)
    a = jnp.maximum(x * s_ref[...][None] + b_ref[...][None], 0.0)
    # 2x2 average pool == sum of the four taps (the /4 is folded into s/b).
    pooled = (a[0] + a[1] + a[2] + a[3]).astype(w_ref.dtype)   # (tm, tk) bf16
    contrib = jnp.dot(pooled, w_ref[...],
                      preferred_element_type=jnp.float32)      # MXU, f32 acc

    if acc_ref is None:
        # Single Cin tile: write directly, no scratch accumulator needed.
        o_ref[...] = contrib.astype(o_ref.dtype)
    else:
        k = pl.program_id(2)

        @pl.when(k == 0)
        def _():
            acc_ref[...] = jnp.zeros_like(acc_ref)

        acc_ref[...] += contrib

        @pl.when(k == pl.num_programs(2) - 1)
        def _():
            o_ref[...] = acc_ref[...].astype(o_ref.dtype)


# ----------------------------------------------------------------------------
# One-time weight preparation (outside jit): pad / transpose / cast to bf16
# ----------------------------------------------------------------------------
def prepare_params(conv_w, *, max_tile=512, weight_dtype=jnp.bfloat16):
    """conv_w may be PyTorch-layout (Cout, Cin, 1, 1) or (Cout, Cin)."""
    if conv_w.ndim == 4:
        conv_w = conv_w[:, :, 0, 0]
    c_out, c_in = conv_w.shape
    tk, tn, ck, co = _tiles(c_in, c_out, max_tile)
    w = jnp.asarray(conv_w, jnp.float32).T                     # (Cin, Cout)
    w = jnp.pad(w, ((0, ck - c_in), (0, co - c_out)))
    return w.astype(weight_dtype)


# ----------------------------------------------------------------------------
# Forward wrapper
# ----------------------------------------------------------------------------
def transition_forward(x_nchw, gamma, beta, w_pad, *, c_out, eps=1e-5,
                       max_tile=512, row_tile=512, act_dtype=jnp.bfloat16,
                       vmem_limit_bytes=48 * 1024 * 1024):
    n, c_in, h, w = x_nchw.shape
    assert h % 2 == 0 and w % 2 == 0, "even spatial dims required (see TODO)"
    ho, wo = h // 2, w // 2
    r = n * ho * wo

    tk, tn, ck, co_pad = _tiles(c_in, c_out, max_tile)
    assert w_pad.shape == (ck, co_pad), (w_pad.shape, (ck, co_pad))

    # Row tile: multiple of 32 (safe for bf16 sublane packing), VMEM-bounded.
    tm = min(row_tile, _round_up(r, 32))
    rp = _round_up(r, tm)

    # --- BN batch statistics (training mode), hoisted out of the kernel. ---
    # The 0.25 pool average is folded in: relu(z) * 0.25 == relu(0.25 * z).
    xf = x_nchw.astype(jnp.float32)
    mean = jnp.mean(xf, axis=(0, 2, 3))                                # (Cin,)
    var = jnp.mean(jnp.square(xf - mean.reshape(1, c_in, 1, 1)),
                   axis=(0, 2, 3))                                     # biased
    scale = 0.25 * gamma.astype(jnp.float32) * jax.lax.rsqrt(var + eps)
    shift = 0.25 * beta.astype(jnp.float32) - mean * scale
    s_pad = jnp.pad(scale, (0, ck - c_in)).reshape(1, ck)
    b_pad = jnp.pad(shift, (0, ck - c_in)).reshape(1, ck)

    # --- The four 2x2-pool taps: one fused reshape/transpose + bf16 cast. ---
    taps = jnp.transpose(x_nchw.reshape(n, c_in, ho, 2, wo, 2),
                         (3, 5, 0, 2, 4, 1))                  # (2,2,N,Ho,Wo,C)
    taps = taps.reshape(4, r, c_in).astype(act_dtype)
    taps = jnp.pad(taps, ((0, 0), (0, rp - r), (0, ck - c_in)))

    grid = (rp // tm, co_pad // tn, ck // tk)
    multi_k = grid[2] > 1

    out = pl.pallas_call(
        _transition_kernel,
        out_shape=jax.ShapeDtypeStruct((rp, co_pad), jnp.float32),
        grid_spec=pltpu.PrefetchScalarGridSpec(
            num_scalar_prefetch=0,
            grid=grid,
            in_specs=[
                pl.BlockSpec((1, tk), lambda i, j, k: (0, k)),          # scale
                pl.BlockSpec((1, tk), lambda i, j, k: (0, k)),          # shift
                pl.BlockSpec((4, tm, tk), lambda i, j, k: (0, i, k)),   # taps
                pl.BlockSpec((tk, tn), lambda i, j, k: (k, j)),         # weight
            ],
            out_specs=pl.BlockSpec((tm, tn), lambda i, j, k: (i, j)),
            scratch_shapes=([pltpu.VMEM((tm, tn), jnp.float32)]
                            if multi_k else []),
        ),
        compiler_params=pltpu.CompilerParams(
            dimension_semantics=("parallel", "parallel", "arbitrary"),
            vmem_limit_bytes=vmem_limit_bytes),
    )(s_pad, b_pad, taps, w_pad)

    out = out[:r, :c_out].reshape(n, ho, wo, c_out)
    return jnp.transpose(out, (0, 3, 1, 2))                    # back to NCHW


# ----------------------------------------------------------------------------
# Pure-JAX reference (literal module order: bn -> relu -> conv1x1 -> avgpool)
# ----------------------------------------------------------------------------
def _transition_ref(x, gamma, beta, conv_w, eps=1e-5):
    mean = jnp.mean(x, axis=(0, 2, 3), keepdims=True)
    var = jnp.mean((x - mean) ** 2, axis=(0, 2, 3), keepdims=True)
    y = (x - mean) * jax.lax.rsqrt(var + eps)
    y = y * gamma.reshape(1, -1, 1, 1) + beta.reshape(1, -1, 1, 1)
    y = jnp.maximum(y, 0.0)
    wm = conv_w.reshape(conv_w.shape[0], conv_w.shape[1])
    z = jnp.einsum('nchw,oc->nohw', y, wm)
    nb, co, hh, ww = z.shape
    return z.reshape(nb, co, hh // 2, 2, ww // 2, 2).mean(axis=(3, 5))


if __name__ == "__main__":
    def run_case(n, c_in, hh, ww, c_out, max_tile, tag, key):
        k_x, k_g, k_b, k_w = jax.random.split(key, 4)
        x = jax.random.normal(k_x, (n, c_in, hh, ww), jnp.float32)
        gamma = 1.0 + 0.1 * jax.random.normal(k_g, (c_in,), jnp.float32)
        beta = 0.1 * jax.random.normal(k_b, (c_in,), jnp.float32)
        conv_w = (jax.random.normal(k_w, (c_out, c_in, 1, 1), jnp.float32)
                  / math.sqrt(c_in))

        # Weight prep happens once, outside the jitted forward.
        w_pad = prepare_params(conv_w, max_tile=max_tile)
        fwd = jax.jit(functools.partial(transition_forward, c_out=c_out,
                                        max_tile=max_tile))
        out = jax.block_until_ready(fwd(x, gamma, beta, w_pad))

        assert out.shape == (n, c_out, hh // 2, ww // 2), (tag, out.shape)
        assert bool(jnp.all(jnp.isfinite(out))), tag

        ref = _transition_ref(x, gamma, beta, conv_w)
        err = float(jnp.max(jnp.abs(out - ref)))
        # Tolerance sized for bf16 taps/weights (stats + matmul accumulate f32).
        assert err < 5e-2, f"{tag}: max abs error vs reference: {err}"

    keys = jax.random.split(jax.random.PRNGKey(0), 2)
    # single Cin tile -> direct-write path (no scratch accumulator)
    run_case(2, 64, 16, 16, 32, 512, "small", keys[0])
    # multiple Cin tiles -> accumulator path
    run_case(2, 256, 16, 16, 128, 128, "multi_k", keys[1])

    print("KERNEL_OK")
</pallas_src>

<mosaic_0001>
module attributes {stable_mosaic.version = 11 : i64} {
  func.func @_transition_kernel(%arg0: i32, %arg1: i32, %arg2: i32, %arg3: memref<1x128xf32, #tpu.memory_space<vmem>>, %arg4: memref<1x128xf32, #tpu.memory_space<vmem>>, %arg5: memref<4x128x128xbf16, #tpu.memory_space<vmem>>, %arg6: memref<128x128xbf16, #tpu.memory_space<vmem>>, %arg7: memref<128x128xf32, #tpu.memory_space<vmem>>) attributes {dimension_semantics = [#tpu.dimension_semantics<parallel>, #tpu.dimension_semantics<parallel>, #tpu.dimension_semantics<arbitrary>], iteration_bounds = array<i64: 1, 1, 1>, scalar_prefetch = 0 : i64, scratch_operands = 0 : i64, tpu.core_type = #tpu.core_type<tc>, window_params = [{transform_indices = @transform_0, window_bounds = array<i64: 1, 128>}, {transform_indices = @transform_1, window_bounds = array<i64: 1, 128>}, {transform_indices = @transform_2, window_bounds = array<i64: 4, 128, 128>}, {transform_indices = @transform_3, window_bounds = array<i64: 128, 128>}, {transform_indices = @transform_4, window_bounds = array<i64: 128, 128>}]} {
    %c0 = arith.constant 0 : index
    %c0_0 = arith.constant 0 : index
    %c0_1 = arith.constant 0 : index
    %0 = vector.load %arg5[%c0, %c0_0, %c0_1] : memref<4x128x128xbf16, #tpu.memory_space<vmem>>, vector<4x128x128xbf16>
    %1 = arith.extf %0 : vector<4x128x128xbf16> to vector<4x128x128xf32>
    %c0_2 = arith.constant 0 : index
    %c0_3 = arith.constant 0 : index
    %2 = vector.load %arg3[%c0_2, %c0_3] : memref<1x128xf32, #tpu.memory_space<vmem>>, vector<1x128xf32>
    %3 = vector.shape_cast %2 : vector<1x128xf32> to vector<1x1x128xf32>
    %4 = vector.broadcast %3 : vector<1x1x128xf32> to vector<4x128x128xf32>
    %5 = arith.mulf %1, %4 : vector<4x128x128xf32>
    %c0_4 = arith.constant 0 : index
    %c0_5 = arith.constant 0 : index
    %6 = vector.load %arg4[%c0_4, %c0_5] : memref<1x128xf32, #tpu.memory_space<vmem>>, vector<1x128xf32>
    %7 = vector.shape_cast %6 : vector<1x128xf32> to vector<1x1x128xf32>
    %8 = vector.broadcast %7 : vector<1x1x128xf32> to vector<4x128x128xf32>
    %9 = arith.addf %5, %8 : vector<4x128x128xf32>
    %cst = arith.constant 0.000000e+00 : f32
    %10 = vector.broadcast %cst : f32 to vector<4x128x128xf32>
    %11 = arith.maximumf %9, %10 : vector<4x128x128xf32>
    %12 = vector.extract_strided_slice %11 {offsets = [0, 0, 0], sizes = [1, 128, 128], strides = [1, 1, 1]} : vector<4x128x128xf32> to vector<1x128x128xf32>
    %13 = vector.shape_cast %12 : vector<1x128x128xf32> to vector<128x128xf32>
    %14 = vector.extract_strided_slice %11 {offsets = [1, 0, 0], sizes = [1, 128, 128], strides = [1, 1, 1]} : vector<4x128x128xf32> to vector<1x128x128xf32>
    %15 = vector.shape_cast %14 : vector<1x128x128xf32> to vector<128x128xf32>
    %16 = arith.addf %13, %15 : vector<128x128xf32>
    %17 = vector.extract_strided_slice %11 {offsets = [2, 0, 0], sizes = [1, 128, 128], strides = [1, 1, 1]} : vector<4x128x128xf32> to vector<1x128x128xf32>
    %18 = vector.shape_cast %17 : vector<1x128x128xf32> to vector<128x128xf32>
    %19 = arith.addf %16, %18 : vector<128x128xf32>
    %20 = vector.extract_strided_slice %11 {offsets = [3, 0, 0], sizes = [1, 128, 128], strides = [1, 1, 1]} : vector<4x128x128xf32> to vector<1x128x128xf32>
    %21 = vector.shape_cast %20 : vector<1x128x128xf32> to vector<128x128xf32>
    %22 = arith.addf %19, %21 : vector<128x128xf32>
    %23 = arith.truncf %22 : vector<128x128xf32> to vector<128x128xbf16>
    %c0_6 = arith.constant 0 : index
    %c0_7 = arith.constant 0 : index
    %24 = vector.load %arg6[%c0_6, %c0_7] : memref<128x128xbf16, #tpu.memory_space<vmem>>, vector<128x128xbf16>
    %cst_8 = arith.constant dense<0.000000e+00> : vector<128x128xf32>
    %25 = tpu.matmul %23, %24, %cst_8 {dimension_numbers = #tpu.dot_dimension_numbers<[1], [0], [0], [1], [0, 0, 1, 1], [], []>} : vector<128x128xbf16>, vector<128x128xbf16>, vector<128x128xf32> -> vector<128x128xf32>
    %c0_9 = arith.constant 0 : index
    %c0_10 = arith.constant 0 : index
    %26 = vector.load %arg7[%c0_9, %c0_10] : memref<128x128xf32, #tpu.memory_space<vmem>>, vector<128x128xf32>
    tpu.vector_store %arg7[%c0_9, %c0_10], %25 {strides = array<i32>} : memref<128x128xf32, #tpu.memory_space<vmem>>, vector<128x128xf32>,
    return
  }
  func.func @transform_0(%arg0: i32, %arg1: i32, %arg2: i32) -> (i32, i32) {
    %c0_i32 = arith.constant 0 : i32
    %c0_i32_0 = arith.constant 0 : i32
    return %c0_i32, %arg2 : i32, i32
  }
  func.func @transform_1(%arg0: i32, %arg1: i32, %arg2: i32) -> (i32, i32) {
    %c0_i32 = arith.constant 0 : i32
    %c0_i32_0 = arith.constant 0 : i32
    return %c0_i32, %arg2 : i32, i32
  }
  func.func @transform_2(%arg0: i32, %arg1: i32, %arg2: i32) -> (i32, i32, i32) {
    %c0_i32 = arith.constant 0 : i32
    %c0_i32_0 = arith.constant 0 : i32
    return %c0_i32, %arg0, %arg2 : i32, i32, i32
  }
  func.func @transform_3(%arg0: i32, %arg1: i32, %arg2: i32) -> (i32, i32) {
    %c0_i32 = arith.constant 0 : i32
    return %arg2, %arg1 : i32, i32
  }
  func.func @transform_4(%arg0: i32, %arg1: i32, %arg2: i32) -> (i32, i32) {
    %c0_i32 = arith.constant 0 : i32
    return %arg0, %arg1 : i32, i32
  }
}

</mosaic_0001>

<bundles_post_ra>
// kernel: transition_forward.1
= control target key start
LH: loop header
LB: loop body
LE: loop exit
PB: predicated region body
PF: predicated region fallthrough
CT: control target
= control target key end

     0   :  { %s1172_s0 = inlined_call_operand.vmem [shape: f32[1,128], index: 0, kind: input, shape index: {}]   ;;  %s1173_s1 = inlined_call_operand.vmem [shape: f32[1,128], index: 1, kind: input, shape index: {}]   ;;  %s1174_s2 = inlined_call_operand.vmem [shape: bf16[4,128,128], index: 2, kind: input, shape index: {}]   ;;  %s1175_s3 = inlined_call_operand.vmem [shape: bf16[128,128], index: 3, kind: input, shape index: {}]   ;;  %s1176_s4 = inlined_call_operand.hbm [shape: f32[128,128], index: 4, kind: output, shape index: {}]  }
   0x1   :  { %v838_v0 = vld [vmem:[%s1175_s3] sm:$0xff]   ;;  %v839_v1 = vld [vmem:[%s1175_s3 + $0x8] sm:$0xff]   ;;  %v840_v2 = vld [vmem:[%s1175_s3 + $0x10] sm:$0xff]  }
   0x2   :  { %787 = vmatprep.subr.bf16.mxu0 %v838_v0  ;;  %819 = vmatprep.subr.bf16.mxu1 %v838_v0  ;;  %v841_v3 = vld [vmem:[%s1175_s3 + $0x18] sm:$0xff]   ;;  %v613_v4 = vld [vmem:[%s1174_s2] sm:$0xff]   ;;  %v843_v42 = vld [vmem:[%s1175_s3 + $0x28] sm:$0xff]  }
   0x3   :  { %788 = vmatpush3.bf16.msra.mxu0 %v838_v0  ;;  %827 = vmatpush3.bf16.msra.mxu1 %v838_v0  ;;  %v747_v5 = vld [vmem:[%s1174_s2 + $0x40] sm:$0xff]   ;;  %v614_v7 = vunpack.c.l.bf16 %v613_v4  ;;  %v615_v8 = vunpack.c.h.bf16 %v613_v4  ;;  %v969_v52 = vld [vmem:[%s1174_s2 + $0x8] sm:$0xff]  }
   0x4   :  { %789 = vmatprep.subr.bf16.mxu0 %v839_v1  ;;  %820 = vmatprep.subr.bf16.mxu1 %v839_v1  ;;  %v755_v6 = vld [vmem:[%s1174_s2 + $0x80] sm:$0xff]   ;;  %v646_v9 = vunpack.c.l.bf16 %v747_v5  ;;  %v647_v10 = vunpack.c.h.bf16 %v747_v5 }
   0x5   :  { %v763_v11 = vld [vmem:[%s1174_s2 + $0xc0] sm:$0xff]   ;;  %v678_v13 = vunpack.c.l.bf16 %v755_v6  ;;  %v679_v14 = vunpack.c.h.bf16 %v755_v6 }
   0x6   :  { %v925_v12 = vld [vmem:[%s1172_s0] ss:$0 sm:$0xff]  ;;  %v710_v15 = vunpack.c.l.bf16 %v763_v11  ;;  %v711_v16 = vunpack.c.h.bf16 %v763_v11 }
   0x7   :  { %790 = vmatpush3.bf16.msra.mxu0 %v839_v1  ;;  %828 = vmatpush3.bf16.msra.mxu1 %v839_v1  ;;  %v930_v17 = vld [vmem:[%s1173_s1] ss:$0 sm:$0xff]  ;;  %v154_v19 = vmul.f32 %v614_v7, %v925_v12  ;;  %v155_v20 = vmul.f32 %v615_v8, %v925_v12  ;;  %v170_v21 = vmul.f32 %v646_v9, %v925_v12 }
   0x8   :  { %791 = vmatprep.subr.bf16.mxu0 %v840_v2  ;;  %821 = vmatprep.subr.bf16.mxu1 %v840_v2  ;;  %v743_v18 = vld [vmem:[%s1174_s2 + $0x20] sm:$0xff]   ;;  %v171_v24 = vmul.f32 %v647_v10, %v925_v12  ;;  %v186_v25 = vmul.f32 %v678_v13, %v925_v12  ;;  %v187_v26 = vmul.f32 %v679_v14, %v925_v12 }
   0x9   :  { %v630_v22 = vunpack.c.l.bf16 %v743_v18  ;;  %v842_v23 = vld [vmem:[%s1175_s3 + $0x20] sm:$0xff]   ;;  %v631_v27 = vunpack.c.h.bf16 %v743_v18  ;;  %v202_v28 = vmul.f32 %v710_v15, %v925_v12  ;;  %v203_v29 = vmul.f32 %v711_v16, %v925_v12 }
   0xa   :  { %v225_v30 = vadd.f32 %v930_v17, %v154_v19  ;;  %v226_v31 = vadd.f32 %v930_v17, %v155_v20  ;;  %v241_v32 = vadd.f32 %v930_v17, %v170_v21  ;;  %v242_v33 = vadd.f32 %v930_v17, %v171_v24  ;;  %v751_v36 = vld [vmem:[%s1174_s2 + $0x60] sm:$0xff]  }
   0xb   :  { %792 = vmatpush3.bf16.msra.mxu0 %v840_v2  ;;  %829 = vmatpush3.bf16.msra.mxu1 %v840_v2  ;;  %v257_v34 = vadd.f32 %v930_v17, %v186_v25  ;;  %v258_v35 = vadd.f32 %v930_v17, %v187_v26  ;;  %v273_v37 = vadd.f32 %v930_v17, %v202_v28  ;;  %v759_v41 = vld [vmem:[%s1174_s2 + $0xa0] sm:$0xff]   ;;  %v662_v50 = vunpack.c.l.bf16 %v751_v36 }
   0xc   :  { %793 = vmatprep.subr.bf16.mxu0 %v841_v3  ;;  %822 = vmatprep.subr.bf16.mxu1 %v841_v3  ;;  %v274_v38 = vadd.f32 %v930_v17, %v203_v29  ;;  %v289_v39 = vmax.f32 %v225_v30, 0.0  ;;  %v290_v40 = vmax.f32 %v226_v31, 0.0  ;;  %v305_v43 = vmax.f32 %v241_v32, 0.0  ;;  %v767_v47 = vld [vmem:[%s1174_s2 + $0xe0] sm:$0xff]  }
   0xd   :  { %v306_v44 = vmax.f32 %v242_v33, 0.0  ;;  %v321_v45 = vmax.f32 %v257_v34, 0.0  ;;  %v322_v46 = vmax.f32 %v258_v35, 0.0  ;;  %v337_v48 = vmax.f32 %v273_v37, 0.0 }
   0xe   :  { %v338_v49 = vmax.f32 %v274_v38, 0.0  ;;  %v663_v51 = vunpack.c.h.bf16 %v751_v36  ;;  %v353_v53 = vadd.f32 %v305_v43, %v289_v39  ;;  %v694_v55 = vunpack.c.l.bf16 %v759_v41 }
   0xf   :  { %794 = vmatpush3.bf16.msra.mxu0 %v841_v3  ;;  %830 = vmatpush3.bf16.msra.mxu1 %v841_v3  ;;  %v354_v54 = vadd.f32 %v306_v44, %v290_v40  ;;  %v695_v56 = vunpack.c.h.bf16 %v759_v41  ;;  %v726_v57 = vunpack.c.l.bf16 %v767_v47  ;;  %v727_v58 = vunpack.c.h.bf16 %v767_v47 }
  0x10   :  { %795 = vmatprep.subr.bf16.mxu0 %v842_v23  ;;  %823 = vmatprep.subr.bf16.mxu1 %v842_v23  ;;  %v162_v59 = vmul.f32 %v630_v22, %v925_v12  ;;  %v163_v60 = vmul.f32 %v631_v27, %v925_v12 }
  0x13   :  { %796 = vmatpush3.bf16.msra.mxu0 %v842_v23  ;;  %831 = vmatpush3.bf16.msra.mxu1 %v842_v23 }
  0x14   :  { %9 = vsyncpa [#allocation3], 0  ;;  %797 = vmatprep.subr.bf16.mxu0 %v843_v42  ;;  %824 = vmatprep.subr.bf16.mxu1 %v843_v42  ;;  %v844_v61 = vld [vmem:[%s1175_s3 + $0x30] sm:$0xff]   ;;  %v369_v62 = vadd.f32 %v353_v53, %v321_v45  ;;  %v370_v63 = vadd.f32 %v354_v54, %v322_v46  ;;  %v178_v0 = vmul.f32 %v662_v50, %v925_v12  ;;  %v618_v1 = vunpack.c.l.bf16 %v969_v52  ;;  %v748_v15 = vld [vmem:[%s1174_s2 + $0x48] sm:$0xff]  }
  0x15   :  { %v179_v2 = vmul.f32 %v663_v51, %v925_v12  ;;  %v194_v3 = vmul.f32 %v694_v55, %v925_v12  ;;  %v195_v4 = vmul.f32 %v695_v56, %v925_v12  ;;  %v210_v5 = vmul.f32 %v726_v57, %v925_v12  ;;  %v845_v16 = vld [vmem:[%s1175_s3 + $0x38] sm:$0xff]   ;;  %v756_v26 = vld [vmem:[%s1174_s2 + $0x88] sm:$0xff]  }
  0x16   :  { %v385_v6 = vadd.f32 %v369_v62, %v337_v48  ;;  %v386_v7 = vadd.f32 %v370_v63, %v338_v49  ;;  %v211_v8 = vmul.f32 %v727_v58, %v925_v12  ;;  %v233_v9 = vadd.f32 %v930_v17, %v162_v59  ;;  %v764_v27 = vld [vmem:[%s1174_s2 + $0xc8] sm:$0xff]  }
  0x17   :  { %798 = vmatpush3.bf16.msra.mxu0 %v843_v42  ;;  %832 = vmatpush3.bf16.msra.mxu1 %v843_v42  ;;  %v234_v10 = vadd.f32 %v930_v17, %v163_v60  ;;  %v249_v11 = vadd.f32 %v930_v17, %v178_v0  ;;  %v250_v13 = vadd.f32 %v930_v17, %v179_v2  ;;  %v619_v14 = vunpack.c.h.bf16 %v969_v52  ;;  %v744_v40 = vld [vmem:[%s1174_s2 + $0x28] sm:$0xff]  }
  0x18   :  { %799 = vmatprep.subr.bf16.mxu0 %v844_v61  ;;  %825 = vmatprep.subr.bf16.mxu1 %v844_v61  ;;  %v401_v18 = vpack.c.bf16 %v386_v7, %v385_v6  ;;  %v265_v19 = vadd.f32 %v930_v17, %v194_v3  ;;  %v266_v20 = vadd.f32 %v930_v17, %v195_v4  ;;  %v297_v21 = vmax.f32 %v233_v9, 0.0  ;;  %v760_v6 = vld [vmem:[%s1174_s2 + $0xa8] sm:$0xff]  }
  0x19   :  { %v281_v22 = vadd.f32 %v930_v17, %v210_v5  ;;  %v282_v23 = vadd.f32 %v930_v17, %v211_v8  ;;  %v298_v24 = vmax.f32 %v234_v10, 0.0  ;;  %v313_v25 = vmax.f32 %v249_v11, 0.0  ;;  %v768_v7 = vld [vmem:[%s1174_s2 + $0xe8] sm:$0xff]  }
  0x1a   :  { %803 = vmatprep.mubr.bf16.mxu0 %v401_v18  ;;  %v314_v28 = vmax.f32 %v250_v13, 0.0  ;;  %v329_v29 = vmax.f32 %v265_v19, 0.0  ;;  %v330_v30 = vmax.f32 %v266_v20, 0.0  ;;  %v650_v31 = vunpack.c.l.bf16 %v748_v15 }
  0x1b   :  { %800 = vmatpush3.bf16.msra.mxu0 %v844_v61  ;;  %833 = vmatpush3.bf16.msra.mxu1 %v844_v61  ;;  %v345_v32 = vmax.f32 %v281_v22, 0.0  ;;  %v346_v33 = vmax.f32 %v282_v23, 0.0  ;;  %v361_v34 = vadd.f32 %v313_v25, %v297_v21  ;;  %v651_v35 = vunpack.c.h.bf16 %v748_v15 }
  0x1c   :  { %801 = vmatprep.subr.bf16.mxu0 %v845_v16  ;;  %826 = vmatprep.subr.bf16.mxu1 %v845_v16  ;;  %v362_v36 = vadd.f32 %v314_v28, %v298_v24  ;;  %v682_v37 = vunpack.c.l.bf16 %v756_v26  ;;  %v683_v38 = vunpack.c.h.bf16 %v756_v26  ;;  %v714_v39 = vunpack.c.l.bf16 %v764_v27 }
  0x1d   :  { %v377_v41 = vadd.f32 %v361_v34, %v329_v29  ;;  %v715_v42 = vunpack.c.h.bf16 %v764_v27  ;;  %v156_v43 = vmul.f32 %v618_v1, %v925_v12  ;;  %v157_v44 = vmul.f32 %v619_v14, %v925_v12  ;;  %v752_v1 = vld [vmem:[%s1174_s2 + $0x68] sm:$0xff]  }
  0x1e   :  { %v378_v45 = vadd.f32 %v362_v36, %v330_v30  ;;  %v172_v46 = vmul.f32 %v650_v31, %v925_v12  ;;  %v173_v47 = vmul.f32 %v651_v35, %v925_v12  ;;  %v188_v48 = vmul.f32 %v682_v37, %v925_v12 }
  0x1f   :  { %802 = vmatpush3.bf16.msra.mxu0 %v845_v16  ;;  %834 = vmatpush3.bf16.msra.mxu1 %v845_v16  ;;  %v393_v49 = vadd.f32 %v377_v41, %v345_v32  ;;  %v189_v50 = vmul.f32 %v683_v38, %v925_v12  ;;  %v204_v51 = vmul.f32 %v714_v39, %v925_v12  ;;  %v634_v52 = vunpack.c.l.bf16 %v744_v40 }
  0x20   :  { %v394_v53 = vadd.f32 %v378_v45, %v346_v33  ;;  %v205_v54 = vmul.f32 %v715_v42, %v925_v12  ;;  %v227_v55 = vadd.f32 %v930_v17, %v156_v43  ;;  %v228_v56 = vadd.f32 %v930_v17, %v157_v44  ;;  %v741_v42 = vld [vmem:[%s1174_s2 + $0x10] sm:$0xff]  }
  0x21   :  { %v243_v57 = vadd.f32 %v930_v17, %v172_v46  ;;  %v244_v58 = vadd.f32 %v930_v17, %v173_v47  ;;  %v259_v59 = vadd.f32 %v930_v17, %v188_v48  ;;  %v260_v60 = vadd.f32 %v930_v17, %v189_v50  ;;  %v749_v47 = vld [vmem:[%s1174_s2 + $0x50] sm:$0xff]  }
  0x22   :  { %v405_v61 = vpack.c.bf16 %v394_v53, %v393_v49  ;;  %v275_v62 = vadd.f32 %v930_v17, %v204_v51  ;;  %v276_v63 = vadd.f32 %v930_v17, %v205_v54  ;;  %v291_v0 = vmax.f32 %v227_v55, 0.0  ;;  %v757_v48 = vld [vmem:[%s1174_s2 + $0x90] sm:$0xff]  }
  0x23   :  { %v292_v2 = vmax.f32 %v228_v56, 0.0  ;;  %v307_v3 = vmax.f32 %v243_v57, 0.0  ;;  %v308_v4 = vmax.f32 %v244_v58, 0.0  ;;  %v323_v5 = vmax.f32 %v259_v59, 0.0  ;;  %v765_v53 = vld [vmem:[%s1174_s2 + $0xd0] sm:$0xff]  }
  0x24   :  { %811 = vmatprep.mubr.bf16.mxu1 %v405_v61  ;;  %v324_v8 = vmax.f32 %v260_v60, 0.0  ;;  %v339_v9 = vmax.f32 %v275_v62, 0.0  ;;  %v340_v10 = vmax.f32 %v276_v63, 0.0  ;;  %v635_v11 = vunpack.c.h.bf16 %v744_v40 }
  0x25   :  { %v355_v13 = vadd.f32 %v307_v3, %v291_v0  ;;  %v356_v14 = vadd.f32 %v308_v4, %v292_v2  ;;  %v666_v15 = vunpack.c.l.bf16 %v752_v1  ;;  %v667_v16 = vunpack.c.h.bf16 %v752_v1 }
  0x26   :  { %v698_v18 = vunpack.c.l.bf16 %v760_v6  ;;  %v699_v19 = vunpack.c.h.bf16 %v760_v6  ;;  %v730_v20 = vunpack.c.l.bf16 %v768_v7  ;;  %v731_v21 = vunpack.c.h.bf16 %v768_v7 }
  0x27   :  { %v371_v22 = vadd.f32 %v355_v13, %v323_v5  ;;  %v372_v23 = vadd.f32 %v356_v14, %v324_v8  ;;  %v164_v24 = vmul.f32 %v634_v52, %v925_v12  ;;  %v165_v25 = vmul.f32 %v635_v11, %v925_v12 }
  0x28   :  { %v180_v26 = vmul.f32 %v666_v15, %v925_v12  ;;  %v181_v27 = vmul.f32 %v667_v16, %v925_v12  ;;  %v196_v28 = vmul.f32 %v698_v18, %v925_v12  ;;  %v197_v29 = vmul.f32 %v699_v19, %v925_v12 }
  0x29   :  { %v387_v30 = vadd.f32 %v371_v22, %v339_v9  ;;  %v388_v31 = vadd.f32 %v372_v23, %v340_v10  ;;  %v212_v32 = vmul.f32 %v730_v20, %v925_v12  ;;  %v213_v33 = vmul.f32 %v731_v21, %v925_v12 }
  0x2a   :  { %v235_v34 = vadd.f32 %v930_v17, %v164_v24  ;;  %v236_v35 = vadd.f32 %v930_v17, %v165_v25  ;;  %v251_v36 = vadd.f32 %v930_v17, %v180_v26  ;;  %v252_v37 = vadd.f32 %v930_v17, %v181_v27  ;;  %v745_v24 = vld [vmem:[%s1174_s2 + $0x30] sm:$0xff]  }
  0x2b   :  { %v402_v38 = vpack.c.bf16 %v388_v31, %v387_v30  ;;  %v267_v39 = vadd.f32 %v930_v17, %v196_v28  ;;  %v268_v40 = vadd.f32 %v930_v17, %v197_v29  ;;  %v283_v41 = vadd.f32 %v930_v17, %v212_v32  ;;  %v753_v29 = vld [vmem:[%s1174_s2 + $0x70] sm:$0xff]  }
  0x2c   :  { %v284_v43 = vadd.f32 %v930_v17, %v213_v33  ;;  %v299_v44 = vmax.f32 %v235_v34, 0.0  ;;  %v300_v45 = vmax.f32 %v236_v35, 0.0  ;;  %v315_v46 = vmax.f32 %v251_v36, 0.0  ;;  %v761_v30 = vld [vmem:[%s1174_s2 + $0xb0] sm:$0xff]  }
  0x2d   :  { %804 = vmatmul.mubr.bf16.vlgmr.msra.gmra.mrb[0].mxu0 %v402_v38  ;;  %v316_v49 = vmax.f32 %v252_v37, 0.0  ;;  %v331_v50 = vmax.f32 %v267_v39, 0.0  ;;  %v332_v51 = vmax.f32 %v268_v40, 0.0  ;;  %v347_v52 = vmax.f32 %v283_v41, 0.0  ;;  %v769_v35 = vld [vmem:[%s1174_s2 + $0xf0] sm:$0xff]  }
  0x2e   :  { %v348_v54 = vmax.f32 %v284_v43, 0.0  ;;  %v363_v55 = vadd.f32 %v315_v46, %v299_v44  ;;  %v622_v56 = vunpack.c.l.bf16 %v741_v42  ;;  %v623_v57 = vunpack.c.h.bf16 %v741_v42 }
  0x2f   :  { %v364_v58 = vadd.f32 %v316_v49, %v300_v45  ;;  %v654_v59 = vunpack.c.l.bf16 %v749_v47  ;;  %v655_v60 = vunpack.c.h.bf16 %v749_v47  ;;  %v686_v61 = vunpack.c.l.bf16 %v757_v48 }
  0x30   :  { %v379_v62 = vadd.f32 %v363_v55, %v331_v50  ;;  %v687_v63 = vunpack.c.h.bf16 %v757_v48  ;;  %v718_v0 = vunpack.c.l.bf16 %v765_v53  ;;  %v719_v1 = vunpack.c.h.bf16 %v765_v53 }
  0x31   :  { %v380_v2 = vadd.f32 %v364_v58, %v332_v51  ;;  %v158_v3 = vmul.f32 %v622_v56, %v925_v12  ;;  %v159_v4 = vmul.f32 %v623_v57, %v925_v12  ;;  %v174_v5 = vmul.f32 %v654_v59, %v925_v12 }
  0x32   :  { %v395_v6 = vadd.f32 %v379_v62, %v347_v52  ;;  %v175_v7 = vmul.f32 %v655_v60, %v925_v12  ;;  %v190_v8 = vmul.f32 %v686_v61, %v925_v12  ;;  %v191_v9 = vmul.f32 %v687_v63, %v925_v12 }
  0x33   :  { %v396_v10 = vadd.f32 %v380_v2, %v348_v54  ;;  %v206_v11 = vmul.f32 %v718_v0, %v925_v12  ;;  %v207_v13 = vmul.f32 %v719_v1, %v925_v12  ;;  %v229_v14 = vadd.f32 %v930_v17, %v158_v3  ;;  %v742_v0 = vld [vmem:[%s1174_s2 + $0x18] sm:$0xff]  }
  0x34   :  { %v230_v15 = vadd.f32 %v930_v17, %v159_v4  ;;  %v245_v16 = vadd.f32 %v930_v17, %v174_v5  ;;  %v246_v18 = vadd.f32 %v930_v17, %v175_v7  ;;  %v261_v19 = vadd.f32 %v930_v17, %v190_v8  ;;  %v750_v5 = vld [vmem:[%s1174_s2 + $0x58] sm:$0xff]  }
  0x35   :  { %v406_v20 = vpack.c.bf16 %v396_v10, %v395_v6  ;;  %v262_v21 = vadd.f32 %v930_v17, %v191_v9  ;;  %v277_v22 = vadd.f32 %v930_v17, %v206_v11  ;;  %v278_v23 = vadd.f32 %v930_v17, %v207_v13  ;;  %v758_v10 = vld [vmem:[%s1174_s2 + $0x98] sm:$0xff]  }
  0x36   :  { %v293_v25 = vmax.f32 %v229_v14, 0.0  ;;  %v294_v26 = vmax.f32 %v230_v15, 0.0  ;;  %v309_v27 = vmax.f32 %v245_v16, 0.0  ;;  %v310_v28 = vmax.f32 %v246_v18, 0.0  ;;  %v766_v11 = vld [vmem:[%s1174_s2 + $0xd8] sm:$0xff]  }
  0x37   :  { %812 = vmatmul.mubr.bf16.vlgmr.msra.gmra.mrb[0].mxu1 %v406_v20  ;;  %v325_v31 = vmax.f32 %v261_v19, 0.0  ;;  %v326_v32 = vmax.f32 %v262_v21, 0.0  ;;  %v341_v33 = vmax.f32 %v277_v22, 0.0  ;;  %v342_v34 = vmax.f32 %v278_v23, 0.0 }
  0x38   :  { %v357_v36 = vadd.f32 %v309_v27, %v293_v25  ;;  %v358_v37 = vadd.f32 %v310_v28, %v294_v26  ;;  %v638_v38 = vunpack.c.l.bf16 %v745_v24  ;;  %v639_v39 = vunpack.c.h.bf16 %v745_v24 }
  0x39   :  { %v670_v40 = vunpack.c.l.bf16 %v753_v29  ;;  %v671_v41 = vunpack.c.h.bf16 %v753_v29  ;;  %v702_v42 = vunpack.c.l.bf16 %v761_v30  ;;  %v703_v43 = vunpack.c.h.bf16 %v761_v30 }
  0x3a   :  { %v373_v44 = vadd.f32 %v357_v36, %v325_v31  ;;  %v374_v45 = vadd.f32 %v358_v37, %v326_v32  ;;  %v734_v46 = vunpack.c.l.bf16 %v769_v35  ;;  %v735_v47 = vunpack.c.h.bf16 %v769_v35 }
  0x3b   :  { %v166_v48 = vmul.f32 %v638_v38, %v925_v12  ;;  %v167_v49 = vmul.f32 %v639_v39, %v925_v12  ;;  %v182_v50 = vmul.f32 %v670_v40, %v925_v12  ;;  %v183_v51 = vmul.f32 %v671_v41, %v925_v12 }
  0x3c   :  { %v389_v52 = vadd.f32 %v373_v44, %v341_v33  ;;  %v390_v53 = vadd.f32 %v374_v45, %v342_v34  ;;  %v198_v54 = vmul.f32 %v702_v42, %v925_v12  ;;  %v199_v55 = vmul.f32 %v703_v43, %v925_v12 }
  0x3d   :  { %v214_v56 = vmul.f32 %v734_v46, %v925_v12  ;;  %v215_v57 = vmul.f32 %v735_v47, %v925_v12  ;;  %v237_v58 = vadd.f32 %v930_v17, %v166_v48  ;;  %v238_v59 = vadd.f32 %v930_v17, %v167_v49  ;;  %v746_v46 = vld [vmem:[%s1174_s2 + $0x38] sm:$0xff]  }
  0x3e   :  { %v403_v60 = vpack.c.bf16 %v390_v53, %v389_v52  ;;  %v253_v61 = vadd.f32 %v930_v17, %v182_v50  ;;  %v254_v62 = vadd.f32 %v930_v17, %v183_v51  ;;  %v269_v63 = vadd.f32 %v930_v17, %v198_v54  ;;  %v754_v51 = vld [vmem:[%s1174_s2 + $0x78] sm:$0xff]  }
  0x3f   :  { %v270_v1 = vadd.f32 %v930_v17, %v199_v55  ;;  %v285_v2 = vadd.f32 %v930_v17, %v214_v56  ;;  %v286_v3 = vadd.f32 %v930_v17, %v215_v57  ;;  %v301_v4 = vmax.f32 %v237_v58, 0.0  ;;  %v762_v56 = vld [vmem:[%s1174_s2 + $0xb8] sm:$0xff]  }
  0x40   :  { %807 = vmatprep.mubr.bf16.mxu0 %v403_v60  ;;  %v302_v6 = vmax.f32 %v238_v59, 0.0  ;;  %v317_v7 = vmax.f32 %v253_v61, 0.0  ;;  %v318_v8 = vmax.f32 %v254_v62, 0.0  ;;  %v333_v9 = vmax.f32 %v269_v63, 0.0  ;;  %v770_v57 = vld [vmem:[%s1174_s2 + $0xf8] sm:$0xff]   ;;  %s870_s2 = smov [#allocation2]  }
  0x41   :  { %v334_v13 = vmax.f32 %v270_v1, 0.0  ;;  %v349_v14 = vmax.f32 %v285_v2, 0.0  ;;  %v350_v15 = vmax.f32 %v286_v3, 0.0  ;;  %v626_v16 = vunpack.c.l.bf16 %v742_v0  ;;  %s591_s13 = sshll.u32 %s870_s2, 4  ;;  %s592_s13 = int_to_ptr.vmem [resolvable:$true] %s591_s13 }
  0x42   :  { %v365_v18 = vadd.f32 %v317_v7, %v301_v4  ;;  %v366_v19 = vadd.f32 %v318_v8, %v302_v6  ;;  %v627_v20 = vunpack.c.h.bf16 %v742_v0  ;;  %v658_v21 = vunpack.c.l.bf16 %v750_v5  ;;  %s846_s14 = scalar_lea.vmem %s592_s13, 2048  ;;  %p851_p1 = scmp.lt.s32.totalorder %s592_s13, %s592_s13 }
  0x43   :  { %v659_v22 = vunpack.c.h.bf16 %v750_v5  ;;  %v690_v23 = vunpack.c.l.bf16 %v758_v10  ;;  %v691_v24 = vunpack.c.h.bf16 %v758_v10  ;;  %v722_v25 = vunpack.c.l.bf16 %v766_v11  ;;  %p847_p0 = scmp.ne.s32.totalorder %s592_s13, %s846_s14  ;;  %p852_p2 = scmp.lt.s32.totalorder %s846_s14, %s846_s14 }
  0x44   :  { %v381_v26 = vadd.f32 %v365_v18, %v333_v9  ;;  %v382_v27 = vadd.f32 %v366_v19, %v334_v13  ;;  %v723_v28 = vunpack.c.h.bf16 %v766_v11  ;;  %v160_v29 = vmul.f32 %v626_v16, %v925_v12 }
  0x45   :  { %v161_v30 = vmul.f32 %v627_v20, %v925_v12  ;;  %v176_v31 = vmul.f32 %v658_v21, %v925_v12  ;;  %v177_v32 = vmul.f32 %v659_v22, %v925_v12  ;;  %v192_v33 = vmul.f32 %v690_v23, %v925_v12  ;;  %p853_p3 = por %p852_p2, %p851_p1 }
  0x46   :  { %v397_v34 = vadd.f32 %v381_v26, %v349_v14  ;;  %v398_v35 = vadd.f32 %v382_v27, %v350_v15  ;;  %v193_v36 = vmul.f32 %v691_v24, %v925_v12  ;;  %v208_v37 = vmul.f32 %v722_v25, %v925_v12 }
  0x47   :  { %v209_v38 = vmul.f32 %v723_v28, %v925_v12  ;;  %v231_v39 = vadd.f32 %v930_v17, %v160_v29  ;;  %v232_v40 = vadd.f32 %v930_v17, %v161_v30  ;;  %v247_v41 = vadd.f32 %v930_v17, %v176_v31  ;;  %p854_p4 = pnand %p853_p3, %p847_p0 }
  0x48   :  { %v407_v42 = vpack.c.bf16 %v398_v35, %v397_v34  ;;  %v248_v43 = vadd.f32 %v930_v17, %v177_v32  ;;  %v263_v44 = vadd.f32 %v930_v17, %v192_v33  ;;  %v264_v45 = vadd.f32 %v930_v17, %v193_v36 }
  0x49   :  { %v279_v47 = vadd.f32 %v930_v17, %v208_v37  ;;  %v280_v48 = vadd.f32 %v930_v17, %v209_v38  ;;  %v295_v49 = vmax.f32 %v231_v39, 0.0  ;;  %v296_v50 = vmax.f32 %v232_v40, 0.0 }
  0x4a   :  { %815 = vmatprep.mubr.bf16.mxu1 %v407_v42  ;;  %v311_v52 = vmax.f32 %v247_v41, 0.0  ;;  %v312_v53 = vmax.f32 %v248_v43, 0.0  ;;  %v327_v54 = vmax.f32 %v263_v44, 0.0  ;;  %v328_v55 = vmax.f32 %v264_v45, 0.0 }
  0x4b   :  { %v343_v58 = vmax.f32 %v279_v47, 0.0  ;;  %v344_v59 = vmax.f32 %v280_v48, 0.0  ;;  %v642_v60 = vunpack.c.l.bf16 %v746_v46  ;;  %v643_v61 = vunpack.c.h.bf16 %v746_v46 }
  0x4c   :  { %v359_v62 = vadd.f32 %v311_v52, %v295_v49  ;;  %v360_v63 = vadd.f32 %v312_v53, %v296_v50  ;;  %v674_v0 = vunpack.c.l.bf16 %v754_v51  ;;  %v675_v1 = vunpack.c.h.bf16 %v754_v51 }
  0x4d   :  { %v706_v2 = vunpack.c.l.bf16 %v762_v56  ;;  %v707_v3 = vunpack.c.h.bf16 %v762_v56  ;;  %v738_v4 = vunpack.c.l.bf16 %v770_v57  ;;  %v739_v5 = vunpack.c.h.bf16 %v770_v57 }
  0x4e   :  { %v375_v6 = vadd.f32 %v359_v62, %v327_v54  ;;  %v376_v7 = vadd.f32 %v360_v63, %v328_v55  ;;  %v168_v8 = vmul.f32 %v642_v60, %v925_v12  ;;  %v169_v9 = vmul.f32 %v643_v61, %v925_v12 }
  0x4f   :  { %v184_v10 = vmul.f32 %v674_v0, %v925_v12  ;;  %v185_v11 = vmul.f32 %v675_v1, %v925_v12  ;;  %v200_v13 = vmul.f32 %v706_v2, %v925_v12  ;;  %v201_v14 = vmul.f32 %v707_v3, %v925_v12 }
  0x50   :  { %v391_v15 = vadd.f32 %v375_v6, %v343_v58  ;;  %v392_v16 = vadd.f32 %v376_v7, %v344_v59  ;;  %v216_v18 = vmul.f32 %v738_v4, %v925_v12  ;;  %v217_v19 = vmul.f32 %v739_v5, %v925_v12 }
  0x51   :  { %v239_v20 = vadd.f32 %v930_v17, %v168_v8  ;;  %v240_v21 = vadd.f32 %v930_v17, %v169_v9  ;;  %v255_v22 = vadd.f32 %v930_v17, %v184_v10  ;;  %v256_v23 = vadd.f32 %v930_v17, %v185_v11 }
  0x52   :  { %v404_v24 = vpack.c.bf16 %v392_v16, %v391_v15  ;;  %v271_v25 = vadd.f32 %v930_v17, %v200_v13  ;;  %v272_v26 = vadd.f32 %v930_v17, %v201_v14  ;;  %v287_v27 = vadd.f32 %v930_v17, %v216_v18 }
  0x53   :  { %v288_v28 = vadd.f32 %v930_v17, %v217_v19  ;;  %v303_v29 = vmax.f32 %v239_v20, 0.0  ;;  %v304_v30 = vmax.f32 %v240_v21, 0.0  ;;  %v319_v12 = vmax.f32 %v255_v22, 0.0 }
  0x54   :  { %808 = vmatmul.mubr.bf16.gmra.mrb[4].mxu0 %v404_v24  ;;  %v320_v31 = vmax.f32 %v256_v23, 0.0  ;;  %v335_v32 = vmax.f32 %v271_v25, 0.0  ;;  %v336_v33 = vmax.f32 %v272_v26, 0.0  ;;  %v351_v34 = vmax.f32 %v287_v27, 0.0 }
  0x55   :  { %v367_v35 = vadd.f32 %v319_v12, %v303_v29  ;;  %v352_v36 = vmax.f32 %v288_v28, 0.0 }
  0x56   :  { %v368_v37 = vadd.f32 %v320_v31, %v304_v30 }
  0x57   :  { %v383_v38 = vadd.f32 %v367_v35, %v335_v32 }
  0x58   :  { %v384_v39 = vadd.f32 %v368_v37, %v336_v33 }
  0x59   :  { %v399_v40 = vadd.f32 %v383_v38, %v351_v34 }
  0x5a   :  { %v400_v41 = vadd.f32 %v384_v39, %v352_v36 }
  0x5c   :  { %v408_v42 = vpack.c.bf16 %v400_v41, %v399_v40 }
  0x5e   :  { %816 = vmatmul.mubr.bf16.gmra.mrb[4].mxu1 %v408_v42 }
 0x100   :  { %v805_v43 = vpop.f32.mrb[0].mxu0 }
 0x101   :  { %572 = vst [vmem:[#allocation2 + $0x10] sm:$0xff] %v805_v43  ;;  %v507_v17 = vpop.f32.mrb[1].mxu0 }
 0x102   :  { %570 = vst [vmem:[#allocation2] sm:$0xff] %v507_v17  ;;  %v806_v44 = vpop.f32.mrb[2].mxu0 }
 0x103   :  { %573 = vst [vmem:[#allocation2 + $0x18] sm:$0xff] %v806_v44  ;;  %v510_v45 = vpop.f32.mrb[3].mxu0 }
 0x104   :  { %571 = vst [vmem:[#allocation2 + $0x8] sm:$0xff] %v510_v45 }
 0x10a   :  { %v813_v46 = vpop.f32.mrb[0].mxu1 }
 0x10b   :  { %580 = vst [vmem:[#allocation2 + $0x50] sm:$0xff] %v813_v46  ;;  %v539_v47 = vpop.f32.mrb[1].mxu1 }
 0x10c   :  { %578 = vst [vmem:[#allocation2 + $0x40] sm:$0xff] %v539_v47  ;;  %v814_v48 = vpop.f32.mrb[2].mxu1 }
 0x10d   :  { %581 = vst [vmem:[#allocation2 + $0x58] sm:$0xff] %v814_v48  ;;  %v542_v49 = vpop.f32.mrb[3].mxu1 }
 0x10e   :  { %579 = vst [vmem:[#allocation2 + $0x48] sm:$0xff] %v542_v49 }
 0x127   :  { %v809_v50 = vpop.f32.mrb[4].mxu0 }
 0x128   :  { %576 = vst [vmem:[#allocation2 + $0x30] sm:$0xff] %v809_v50  ;;  %v523_v51 = vpop.f32.mrb[5].mxu0 }
 0x129   :  { %574 = vst [vmem:[#allocation2 + $0x20] sm:$0xff] %v523_v51  ;;  %v810_v52 = vpop.f32.mrb[6].mxu0 }
 0x12a   :  { %577 = vst [vmem:[#allocation2 + $0x38] sm:$0xff] %v810_v52  ;;  %v526_v53 = vpop.f32.mrb[7].mxu0 }
 0x12b   :  { %575 = vst [vmem:[#allocation2 + $0x28] sm:$0xff] %v526_v53 }
 0x131   :  { %v817_v54 = vpop.f32.mrb[4].mxu1 }
 0x132   :  { %584 = vst [vmem:[#allocation2 + $0x70] sm:$0xff] %v817_v54  ;;  %v555_v55 = vpop.f32.mrb[5].mxu1 }
 0x133   :  { %582 = vst [vmem:[#allocation2 + $0x60] sm:$0xff] %v555_v55  ;;  %v818_v56 = vpop.f32.mrb[6].mxu1 }
 0x134   :  { %585 = vst [vmem:[#allocation2 + $0x78] sm:$0xff] %v818_v56  ;;  %v558_v57 = vpop.f32.mrb[7].mxu1 }
 0x135   :  { %583 = vst [vmem:[#allocation2 + $0x68] sm:$0xff] %v558_v57 }
 0x136   :  { %857 = shalt.err (!%p854_p4)
}
 0x137   :  { %s858_s17 = scalar_lea.hbm %s1176_s4, 2048 }
 0x138   :  { %p859_p5 = scmp.ne.s32.totalorder %s1176_s4, %s858_s17  ;;  %p862_p6 = scmp.lt.u32.totalorder %s858_s17, %s1176_s4 }
 0x13a   :  { %p864_p7 = pnand %p862_p6, %p859_p5 }
 0x13c   :  { %867 = shalt.err (!%p864_p7)
}
 0x13d   :  { %s871_s22 = smov 128   ;;  %s872_s23 = smov 8  }
 0x13e   :  { %597 = dma.vmem_to_hbm [thread:$0]  %s592_s13, 2048, %s1176_s4, [#allocation3], %s871_s22, %s871_s22, %s872_s23  }
 0x13f   :  { %868 = dma.done.wait [#allocation3], 2048  }
 0x140   :  { %869 = vsyncadd [#allocation3], 4294965248 }
 0x141   :  { %601 = vsyncpa [#allocation3], 1 }

</bundles_post_ra>
